<compile_context>
chip_gen: v6e
topology: v6e:2x2x1
jax: 0.10.0
libtpu: 0.0.40
codegen_flags: <defaults>
</compile_context>

<pallas_src>
import jax
import jax.numpy as jnp
from jax.experimental import pallas as pl
from jax.experimental.pallas import tpu as pltpu


_SUBLANE = 8      # sublane granularity (second-to-last dim)
_LANE = 128       # lane granularity (last dim)
_TB_MAX = 256     # batch-tile cap (sublane axis)
_TM_MAX = 512     # memory-tile cap (lane axis); >=512 lanes ~ HBM roofline


def _usage_kernel(ww_ref, fg_ref, rw_ref, pu_ref, out_ref):
    """One (tb, tm) tile of the DNC usage update.

    ww_ref : (W, tb, tm)  write weights, head axis leading
    fg_ref : (tb, R)      free gate
    rw_ref : (R, tb, tm)  read weights, head axis leading
    pu_ref : (tb, tm)     previous usage
    out_ref: (tb, tm)     new usage
    """
    num_writes = ww_ref.shape[0]
    num_reads = rw_ref.shape[0]

    pu = pu_ref[...].astype(jnp.float32)

    # --- usage after write: 1 - prod_w (1 - w_w)
    # Chained multiplies across dense head slices (pure VPU work).
    not_written = 1.0 - ww_ref[0].astype(jnp.float32)
    for w in range(1, num_writes):
        not_written = not_written * (1.0 - ww_ref[w].astype(jnp.float32))
    write_w = 1.0 - not_written
    usage = pu + (1.0 - pu) * write_w

    # --- usage after read: phi = prod_r (1 - fg_r * rw_r)
    # Unrolled over the small read-head axis; only one (tb, tm) accumulator
    # stays live, no (B, R, M) broadcast temporary is materialized.
    fg = fg_ref[...].astype(jnp.float32)                        # (tb, R)
    phi = 1.0 - fg[:, 0:1] * rw_ref[0].astype(jnp.float32)
    for r in range(1, num_reads):
        phi = phi * (1.0 - fg[:, r:r + 1] * rw_ref[r].astype(jnp.float32))

    out_ref[...] = (usage * phi).astype(out_ref.dtype)


def _round_up(x, m):
    return x + (-x) % m


def _pad_to(x, shape):
    pads = [(0, t - s) for s, t in zip(x.shape, shape)]
    if all(p == (0, 0) for p in pads):
        return x
    return jnp.pad(x, pads)


def usage_forward(write_weights, free_gate, read_weights, prev_usage):
    """Pallas wrapper for the DNC Usage forward pass."""
    B, W, M = write_weights.shape
    B2, R = free_gate.shape
    assert B2 == B and read_weights.shape == (B, R, M)
    assert prev_usage.shape == (B, M)
    out_dtype = prev_usage.dtype

    # Head-leading layout so each head slice is a dense (sublane, lane) tile.
    ww = jnp.transpose(write_weights, (1, 0, 2))   # (W, B, M)
    rw = jnp.transpose(read_weights, (1, 0, 2))    # (R, B, M)

    # Pad to lane/sublane-dense shapes and pick tile sizes.
    Bp = _round_up(B, _SUBLANE)
    Mp = _round_up(M, _LANE)
    if Bp <= _TB_MAX:
        tb = Bp
    else:
        Bp = _round_up(Bp, _TB_MAX)
        tb = _TB_MAX
    if Mp <= _TM_MAX:
        tm = Mp
    else:
        Mp = _round_up(Mp, _TM_MAX)
        tm = _TM_MAX

    ww = _pad_to(ww, (W, Bp, Mp))
    fg = _pad_to(free_gate, (Bp, R))
    rw = _pad_to(rw, (R, Bp, Mp))
    pu = _pad_to(prev_usage, (Bp, Mp))

    nb, nm = Bp // tb, Mp // tm

    if nb == 1 and nm == 1:
        # Small case: whole arrays resident in VMEM, no grid / no per-step
        # pipeline bookkeeping.
        out = pl.pallas_call(
            _usage_kernel,
            out_shape=jax.ShapeDtypeStruct((Bp, Mp), out_dtype),
        )(ww, fg, rw, pu)
    else:
        # Production-scale path: independent lane-dense (B, M) tiles; both
        # grid axes parallel (shards across the 2 TensorCores on v7x).
        out = pl.pallas_call(
            _usage_kernel,
            out_shape=jax.ShapeDtypeStruct((Bp, Mp), out_dtype),
            grid=(nb, nm),
            in_specs=[
                pl.BlockSpec((W, tb, tm), lambda i, j: (0, i, j)),
                pl.BlockSpec((tb, R), lambda i, j: (i, 0)),
                pl.BlockSpec((R, tb, tm), lambda i, j: (0, i, j)),
                pl.BlockSpec((tb, tm), lambda i, j: (i, j)),
            ],
            out_specs=pl.BlockSpec((tb, tm), lambda i, j: (i, j)),
            compiler_params=pltpu.CompilerParams(
                dimension_semantics=("parallel", "parallel")),
        )(ww, fg, rw, pu)

    if (Bp, Mp) != (B, M):
        out = out[:B, :M]
    return out


def usage_reference(write_weights, free_gate, read_weights, prev_usage):
    """Pure-JAX reference mirroring the PyTorch forward."""
    ww = 1.0 - jnp.prod(1.0 - write_weights, axis=1)
    usage = prev_usage + (1.0 - prev_usage) * ww
    free_read_w = 1.0 - free_gate[:, :, None] * read_weights
    phi = jnp.prod(free_read_w, axis=1)
    return usage * phi


if __name__ == "__main__":
    key = jax.random.PRNGKey(0)

    # Two configs: the module default memory_size=100 (gridless path, padding
    # exercised) and a larger one exercising the tiled (B, M) grid path.
    for (B, W, R, M) in [(8, 2, 4, 100), (48, 2, 4, 640)]:
        k1, k2, k3, k4, key = jax.random.split(key, 5)
        # All quantities lie in [0, 1] as the DNC usage math expects.
        write_weights = jax.random.uniform(k1, (B, W, M), dtype=jnp.float32)
        free_gate = jax.random.uniform(k2, (B, R), dtype=jnp.float32)
        read_weights = jax.random.uniform(k3, (B, R, M), dtype=jnp.float32)
        prev_usage = jax.random.uniform(k4, (B, M), dtype=jnp.float32)

        out = jax.block_until_ready(
            usage_forward(write_weights, free_gate, read_weights, prev_usage))
        ref = usage_reference(write_weights, free_gate, read_weights,
                              prev_usage)
        assert out.shape == (B, M)
        assert jnp.allclose(out, ref, atol=1e-6, rtol=1e-5), (
            f"mismatch vs reference at B={B}, M={M}")

    print("KERNEL_OK")
</pallas_src>

<mosaic_0001>
module attributes {stable_mosaic.version = 11 : i64} {
  func.func @_usage_kernel(%arg0: memref<2x8x128xf32, #tpu.memory_space<vmem>>, %arg1: memref<8x4xf32, #tpu.memory_space<vmem>>, %arg2: memref<4x8x128xf32, #tpu.memory_space<vmem>>, %arg3: memref<8x128xf32, #tpu.memory_space<vmem>>, %arg4: memref<8x128xf32, #tpu.memory_space<vmem>>) attributes {dimension_semantics = [], scalar_prefetch = 0 : i64, scratch_operands = 0 : i64, tpu.core_type = #tpu.core_type<tc>} {
    %c0 = arith.constant 0 : index
    %c0_0 = arith.constant 0 : index
    %0 = vector.load %arg3[%c0, %c0_0] : memref<8x128xf32, #tpu.memory_space<vmem>>, vector<8x128xf32>
    %c0_1 = arith.constant 0 : index
    %c0_2 = arith.constant 0 : index
    %c0_3 = arith.constant 0 : index
    %1 = vector.load %arg0[%c0_1, %c0_2, %c0_3] : memref<2x8x128xf32, #tpu.memory_space<vmem>>, vector<1x8x128xf32>
    %2 = vector.shape_cast %1 : vector<1x8x128xf32> to vector<8x128xf32>
    %cst = arith.constant 1.000000e+00 : f32
    %3 = vector.broadcast %cst : f32 to vector<8x128xf32>
    %4 = arith.subf %3, %2 : vector<8x128xf32>
    %c1 = arith.constant 1 : index
    %c0_4 = arith.constant 0 : index
    %c0_5 = arith.constant 0 : index
    %5 = vector.load %arg0[%c1, %c0_4, %c0_5] : memref<2x8x128xf32, #tpu.memory_space<vmem>>, vector<1x8x128xf32>
    %6 = vector.shape_cast %5 : vector<1x8x128xf32> to vector<8x128xf32>
    %cst_6 = arith.constant 1.000000e+00 : f32
    %7 = vector.broadcast %cst_6 : f32 to vector<8x128xf32>
    %8 = arith.subf %7, %6 : vector<8x128xf32>
    %9 = arith.mulf %4, %8 : vector<8x128xf32>
    %cst_7 = arith.constant 1.000000e+00 : f32
    %10 = vector.broadcast %cst_7 : f32 to vector<8x128xf32>
    %11 = arith.subf %10, %9 : vector<8x128xf32>
    %cst_8 = arith.constant 1.000000e+00 : f32
    %12 = vector.broadcast %cst_8 : f32 to vector<8x128xf32>
    %13 = arith.subf %12, %0 : vector<8x128xf32>
    %14 = arith.mulf %13, %11 : vector<8x128xf32>
    %15 = arith.addf %0, %14 : vector<8x128xf32>
    %c0_9 = arith.constant 0 : index
    %c0_10 = arith.constant 0 : index
    %16 = vector.load %arg1[%c0_9, %c0_10] : memref<8x4xf32, #tpu.memory_space<vmem>>, vector<8x4xf32>
    %17 = vector.extract_strided_slice %16 {offsets = [0, 0], sizes = [8, 1], strides = [1, 1]} : vector<8x4xf32> to vector<8x1xf32>
    %c0_11 = arith.constant 0 : index
    %c0_12 = arith.constant 0 : index
    %c0_13 = arith.constant 0 : index
    %18 = vector.load %arg2[%c0_11, %c0_12, %c0_13] : memref<4x8x128xf32, #tpu.memory_space<vmem>>, vector<1x8x128xf32>
    %19 = vector.shape_cast %18 : vector<1x8x128xf32> to vector<8x128xf32>
    %20 = vector.broadcast %17 : vector<8x1xf32> to vector<8x128xf32>
    %21 = arith.mulf %20, %19 : vector<8x128xf32>
    %cst_14 = arith.constant 1.000000e+00 : f32
    %22 = vector.broadcast %cst_14 : f32 to vector<8x128xf32>
    %23 = arith.subf %22, %21 : vector<8x128xf32>
    %24 = vector.extract_strided_slice %16 {offsets = [0, 1], sizes = [8, 1], strides = [1, 1]} : vector<8x4xf32> to vector<8x1xf32>
    %c1_15 = arith.constant 1 : index
    %c0_16 = arith.constant 0 : index
    %c0_17 = arith.constant 0 : index
    %25 = vector.load %arg2[%c1_15, %c0_16, %c0_17] : memref<4x8x128xf32, #tpu.memory_space<vmem>>, vector<1x8x128xf32>
    %26 = vector.shape_cast %25 : vector<1x8x128xf32> to vector<8x128xf32>
    %27 = vector.broadcast %24 : vector<8x1xf32> to vector<8x128xf32>
    %28 = arith.mulf %27, %26 : vector<8x128xf32>
    %cst_18 = arith.constant 1.000000e+00 : f32
    %29 = vector.broadcast %cst_18 : f32 to vector<8x128xf32>
    %30 = arith.subf %29, %28 : vector<8x128xf32>
    %31 = arith.mulf %23, %30 : vector<8x128xf32>
    %32 = vector.extract_strided_slice %16 {offsets = [0, 2], sizes = [8, 1], strides = [1, 1]} : vector<8x4xf32> to vector<8x1xf32>
    %c2 = arith.constant 2 : index
    %c0_19 = arith.constant 0 : index
    %c0_20 = arith.constant 0 : index
    %33 = vector.load %arg2[%c2, %c0_19, %c0_20] : memref<4x8x128xf32, #tpu.memory_space<vmem>>, vector<1x8x128xf32>
    %34 = vector.shape_cast %33 : vector<1x8x128xf32> to vector<8x128xf32>
    %35 = vector.broadcast %32 : vector<8x1xf32> to vector<8x128xf32>
    %36 = arith.mulf %35, %34 : vector<8x128xf32>
    %cst_21 = arith.constant 1.000000e+00 : f32
    %37 = vector.broadcast %cst_21 : f32 to vector<8x128xf32>
    %38 = arith.subf %37, %36 : vector<8x128xf32>
    %39 = arith.mulf %31, %38 : vector<8x128xf32>
    %40 = vector.extract_strided_slice %16 {offsets = [0, 3], sizes = [8, 1], strides = [1, 1]} : vector<8x4xf32> to vector<8x1xf32>
    %c3 = arith.constant 3 : index
    %c0_22 = arith.constant 0 : index
    %c0_23 = arith.constant 0 : index
    %41 = vector.load %arg2[%c3, %c0_22, %c0_23] : memref<4x8x128xf32, #tpu.memory_space<vmem>>, vector<1x8x128xf32>
    %42 = vector.shape_cast %41 : vector<1x8x128xf32> to vector<8x128xf32>
    %43 = vector.broadcast %40 : vector<8x1xf32> to vector<8x128xf32>
    %44 = arith.mulf %43, %42 : vector<8x128xf32>
    %cst_24 = arith.constant 1.000000e+00 : f32
    %45 = vector.broadcast %cst_24 : f32 to vector<8x128xf32>
    %46 = arith.subf %45, %44 : vector<8x128xf32>
    %47 = arith.mulf %39, %46 : vector<8x128xf32>
    %48 = arith.mulf %15, %47 : vector<8x128xf32>
    %c0_25 = arith.constant 0 : index
    %c0_26 = arith.constant 0 : index
    %49 = vector.load %arg4[%c0_25, %c0_26] : memref<8x128xf32, #tpu.memory_space<vmem>>, vector<8x128xf32>
    tpu.vector_store %arg4[%c0_25, %c0_26], %48 {strides = array<i32>} : memref<8x128xf32, #tpu.memory_space<vmem>>, vector<8x128xf32>,
    return
  }
}

</mosaic_0001>

<bundles_post_ra>
// kernel: tpu_custom_call.1
= control target key start
LH: loop header
LB: loop body
LE: loop exit
PB: predicated region body
PF: predicated region fallthrough
CT: control target
= control target key end

     0   :  { %9 = vsyncpa [#allocation3], 0  ;;  %s240_s0 = inlined_call_operand.hbm [shape: f32[2,8,128], index: 0, kind: input, shape index: {}]   ;;  %s241_s1 = inlined_call_operand.vmem [shape: f32[8,4], index: 1, kind: input, shape index: {}]   ;;  %s242_s2 = inlined_call_operand.hbm [shape: f32[4,8,128], index: 2, kind: input, shape index: {}]   ;;  %s243_s3 = inlined_call_operand.vmem [shape: f32[8,128], index: 3, kind: input, shape index: {}]   ;;  %s244_s4 = inlined_call_operand.hbm [shape: f32[8,128], index: 4, kind: output, shape index: {}]  }
   0x1   :  { %10 = vsyncpa [#allocation6], 0 }
   0x2   :  { %11 = vsyncpa [#allocation4], 0  ;;  %s191_s15 = smov [#allocation2]  }
   0x3   :  { %s17_s16 = sshll.u32 %s191_s15, 4  ;;  %s18_s16 = int_to_ptr.vmem [resolvable:$true] %s17_s16 }
   0x4   :  { %s133_s17 = scalar_lea.vmem %s18_s16, 256  ;;  %p138_p1 = scmp.lt.s32.totalorder %s18_s16, %s18_s16 }
   0x5   :  { %p134_p0 = scmp.ne.s32.totalorder %s18_s16, %s133_s17  ;;  %p139_p2 = scmp.lt.s32.totalorder %s133_s17, %s133_s17 }
   0x7   :  { %p140_p3 = por %p139_p2, %p138_p1 }
   0x9   :  { %p141_p4 = pnand %p140_p3, %p134_p0 }
   0xb   :  { %144 = shalt.err (!%p141_p4)
}
   0xc   :  { %s192_s18 = smov 128   ;;  %s193_s19 = smov 8  }
   0xd   :  { %23 = dma.hbm_to_vmem [thread:$0]  %s240_s0, 256, %s18_s16, [#allocation3], %s192_s18, %s192_s18, %s193_s19  }
   0xe   :  { %s194_s22 = smov [#allocation5]  }
   0xf   :  { %s31_s23 = sshll.u32 %s194_s22, 4  ;;  %s32_s23 = int_to_ptr.vmem [resolvable:$true] %s31_s23 }
  0x10   :  { %s153_s24 = scalar_lea.vmem %s32_s23, 512  ;;  %p158_p6 = scmp.lt.s32.totalorder %s32_s23, %s32_s23 }
  0x11   :  { %p154_p5 = scmp.ne.s32.totalorder %s32_s23, %s153_s24  ;;  %p159_p7 = scmp.lt.s32.totalorder %s153_s24, %s153_s24 }
  0x13   :  { %p160_p8 = por %p159_p7, %p158_p6 }
  0x15   :  { %p161_p9 = pnand %p160_p8, %p154_p5 }
  0x17   :  { %164 = shalt.err (!%p161_p9)
}
  0x18   :  { %37 = dma.hbm_to_vmem [thread:$0]  %s242_s2, 512, %s32_s23, [#allocation6], %s192_s18, %s192_s18, %s193_s19  }
  0x19   :  { %185 = dma.done.wait [#allocation3], 256  }
  0x1a   :  { %186 = vsyncadd [#allocation3], 4294967040 }
  0x1b   :  { %187 = dma.done.wait [#allocation6], 512  }
  0x1c   :  { %188 = vsyncadd [#allocation6], 4294966784  ;;  %v195_v0 = vmov 0   ;;  %v196_v1 = vmov 2   ;;  %v57_v2 = vld [vmem:[%s241_s1] sm:$0xff]  ;;  %v197_v3 = vmov 1  }
  0x1d   :  { %120 = vset.pattern.permute.xlu0 %v195_v0  ;;  %122 = vset.pattern.permute.xlu1 %v196_v1  ;;  %v198_v4 = vmov 3   ;;  %v47_v5 = vld [vmem:[#allocation2] sm:$0xff]  ;;  %v50_v6 = vld [vmem:[#allocation2 + $0x8] sm:$0xff]  ;;  %v58_v12 = vld [vmem:[#allocation5] sm:$0xff]  ;;  %s199_s1 = smov [#allocation7]  }
  0x1e   :  { %61 = vperm.xlu0 %120, %v57_v2   ;;  %78 = vperm.xlu1 %122, %v57_v2   ;;  %v48_v7 = vsub.f32 1.0, %v47_v5  ;;  %v51_v8 = vsub.f32 1.0, %v50_v6  ;;  %v46_v13 = vld [vmem:[%s243_s3] sm:$0xff]  ;;  %v67_v15 = vld [vmem:[#allocation5 + $0x8] sm:$0xff]  ;;  %v85_v16 = vld [vmem:[#allocation5 + $0x18] sm:$0xff]  ;;  %s101_s3 = sshll.u32 %s199_s1, 4  ;;  %s102_s3 = int_to_ptr.vmem [resolvable:$true] %s101_s3 }
  0x1f   :  { %v76_v14 = vld [vmem:[#allocation5 + $0x10] sm:$0xff]  ;;  %v54_v19 = vsub.f32 1.0, %v46_v13  ;;  %s165_s29 = scalar_lea.vmem %s102_s3, 128  ;;  %p170_p11 = scmp.lt.s32.totalorder %s102_s3, %s102_s3 }
  0x20   :  { %v52_v11 = vmul.f32 %v51_v8, %v48_v7  ;;  %p166_p10 = scmp.ne.s32.totalorder %s102_s3, %s165_s29  ;;  %p171_p12 = scmp.lt.s32.totalorder %s165_s29, %s165_s29 }
  0x22   :  { %121 = vset.pattern.permute.xlu0 %v197_v3  ;;  %123 = vset.pattern.permute.xlu1 %v198_v4  ;;  %v53_v18 = vsub.f32 1.0, %v52_v11  ;;  %p172_p13 = por %p171_p12, %p170_p11 }
  0x23   :  { %69 = vperm.xlu0 %121, %v57_v2   ;;  %87 = vperm.xlu1 %123, %v57_v2  }
  0x24   :  { %v55_v27 = vmul.f32 %v54_v19, %v53_v18  ;;  %p173_p0 = pnand %p172_p13, %p166_p10 }
  0x26   :  { %v56_v32 = vadd.f32 %v55_v27, %v46_v13 }
  0x27   :  { %124 = vset.pattern.permute.xlu0 %v198_v4 }
  0x99   :  { %v62_v9 = vpop.permute.xlu0 %61  ;;  %v79_v10 = vpop.permute.xlu1 %78 }
  0x9a   :  { %v64_v17 = vmul.f32 %v62_v9, %v58_v12  ;;  %v81_v22 = vmul.f32 %v79_v10, %v76_v14 }
  0x9c   :  { %v65_v25 = vsub.f32 1.0, %v64_v17  ;;  %v82_v28 = vsub.f32 1.0, %v81_v22 }
  0x9e   :  { %v70_v20 = vpop.permute.xlu0 %69  ;;  %v88_v21 = vpop.permute.xlu1 %87 }
  0x9f   :  { %v72_v23 = vmul.f32 %v70_v20, %v67_v15  ;;  %v90_v24 = vmul.f32 %v88_v21, %v85_v16 }
  0xa1   :  { %v73_v26 = vsub.f32 1.0, %v72_v23  ;;  %v91_v30 = vsub.f32 1.0, %v90_v24 }
  0xa3   :  { %v74_v29 = vmul.f32 %v73_v26, %v65_v25 }
  0xa5   :  { %v83_v31 = vmul.f32 %v82_v28, %v74_v29 }
  0xa7   :  { %v92_v33 = vmul.f32 %v91_v30, %v83_v31 }
  0xa9   :  { %v93_v34 = vmul.f32 %v92_v33, %v56_v32 }
  0xab   :  { %94 = vst [vmem:[#allocation7] sm:$0xff] %v93_v34 }
  0xac   :  { %176 = shalt.err (!%p173_p0)
}
  0xad   :  { %104 = dma.vmem_to_hbm [thread:$0]  %s102_s3, 128, %s244_s4, [#allocation4]  }
  0xae   :  { %189 = dma.done.wait [#allocation4], 128  }
  0xaf   :  { %190 = vsyncadd [#allocation4], 4294967168 }
  0xb0   :  { %108 = vsyncpa [#allocation3], 1 }
  0xb1   :  { %109 = vsyncpa [#allocation6], 1 }
  0xb2   :  { %110 = vsyncpa [#allocation4], 1 }

</bundles_post_ra>
